<compile_context>
chip_gen: v7x
topology: tpu7x:2x2x1
jax: 0.10.0
libtpu: 0.0.40
codegen_flags: <defaults>
</compile_context>

<pallas_src>
import jax
import jax.numpy as jnp
from jax.experimental import pallas as pl
from jax.experimental.pallas import tpu as pltpu


def _fused_linear_kernel(x_ref, w_ref, b_ref, o_ref):
    # out = x @ W + b     (single MXU matmul, f32 accumulation)
    acc = jnp.dot(x_ref[...], w_ref[...], preferred_element_type=jnp.float32)
    o_ref[...] = (acc + b_ref[...]).astype(o_ref.dtype)


def net_forward(x, w1, b1, w2, b2, *, tile_b=4096):
    """Forward pass of `net`.

    x:  (B, 8)   input
    w1: (8, 4)   fc1 weight, pre-transposed to [in, out]
    b1: (1, 4)   fc1 bias
    w2: (4, C)   fc2 weight, pre-transposed to [in, out]
    b2: (1, C)   fc2 bias
    returns (B, C)
    """
    B, F = x.shape
    C = w2.shape[1]

    # --- Fuse the two affine layers (valid: no nonlinearity in between) ---
    w = jnp.dot(w1, w2, preferred_element_type=jnp.float32)            # (8, C)
    b = jnp.dot(b1, w2, preferred_element_type=jnp.float32) + b2       # (1, C)
    w = w.astype(x.dtype)
    b = b.astype(x.dtype)

    # --- Batch tiling: round the tile to a multiple of 8 sublanes, cap it by
    #     the (8-rounded) batch so small batches use a single small tile. ---
    tile_b = max(8, (int(tile_b) // 8) * 8)
    tile_b_eff = max(8, min(tile_b, ((B + 7) // 8) * 8))
    grid = (pl.cdiv(B, tile_b_eff),)

    # --- Advisory cost: this kernel is memory-bound. ---
    itemsize = jnp.dtype(x.dtype).itemsize
    cost = pl.CostEstimate(
        flops=2 * B * F * C,
        transcendentals=0,
        bytes_accessed=(B * F + F * C + C + B * C) * itemsize,
    )

    vmem = pltpu.MemorySpace.VMEM
    out = pl.pallas_call(
        _fused_linear_kernel,
        out_shape=jax.ShapeDtypeStruct((B, C), x.dtype),
        grid=grid,
        in_specs=[
            pl.BlockSpec((tile_b_eff, F), lambda i: (i, 0), memory_space=vmem),
            pl.BlockSpec((F, C), lambda i: (0, 0), memory_space=vmem),
            pl.BlockSpec((1, C), lambda i: (0, 0), memory_space=vmem),
        ],
        out_specs=pl.BlockSpec(
            (tile_b_eff, C), lambda i: (i, 0), memory_space=vmem
        ),
        compiler_params=pltpu.CompilerParams(
            dimension_semantics=("parallel",)
        ),
        cost_estimate=cost,
    )(x, w, b)

    return out


def init_params(key, num_class=10):
    """Deterministic init mimicking torch.nn.Linear default (uniform +-1/sqrt(fan_in))."""
    k1, k2, k3, k4 = jax.random.split(key, 4)
    bound1 = 1.0 / jnp.sqrt(8.0)
    bound2 = 1.0 / jnp.sqrt(4.0)
    # stored already transposed: [in, out]
    w1 = jax.random.uniform(k1, (8, 4), jnp.float32, -bound1, bound1)
    b1 = jax.random.uniform(k2, (1, 4), jnp.float32, -bound1, bound1)
    w2 = jax.random.uniform(k3, (4, num_class), jnp.float32, -bound2, bound2)
    b2 = jax.random.uniform(k4, (1, num_class), jnp.float32, -bound2, bound2)
    return w1, b1, w2, b2


if __name__ == "__main__":
    key = jax.random.PRNGKey(0)
    kx, kp = jax.random.split(key)

    batch = 2
    num_class = 10
    x = jax.random.normal(kx, (batch, 8), jnp.float32)
    w1, b1, w2, b2 = init_params(kp, num_class=num_class)

    out = net_forward(x, w1, b1, w2, b2)
    jax.block_until_ready(out)

    # Reference check in plain JAX (same math as the torch forward).
    ref = (x @ w1 + b1) @ w2 + b2
    assert out.shape == (batch, num_class)
    assert jnp.allclose(out, ref, atol=1e-5, rtol=1e-5)

    # Also exercise a larger, ragged batch (not a multiple of the tile or 8)
    # to check the clipped trailing block path.
    xb = jax.random.normal(kx, (1003, 8), jnp.float32)
    outb = net_forward(xb, w1, b1, w2, b2, tile_b=512)
    jax.block_until_ready(outb)
    refb = (xb @ w1 + b1) @ w2 + b2
    assert outb.shape == (1003, num_class)
    assert jnp.allclose(outb, refb, atol=1e-5, rtol=1e-5)

    print("KERNEL_OK")
</pallas_src>

<mosaic_0001>
module attributes {stable_mosaic.version = 11 : i64} {
  func.func @_fused_linear_kernel(%arg0: i32, %arg1: memref<8x8xf32, #tpu.memory_space<vmem>>, %arg2: memref<8x10xf32, #tpu.memory_space<vmem>>, %arg3: memref<1x10xf32, #tpu.memory_space<vmem>>, %arg4: memref<8x10xf32, #tpu.memory_space<vmem>>) attributes {dimension_semantics = [#tpu.dimension_semantics<parallel>], iteration_bounds = array<i64: 1>, scalar_prefetch = 0 : i64, scratch_operands = 0 : i64, tpu.core_type = #tpu.core_type<tc>, window_params = [{transform_indices = @transform_0, window_bounds = array<i64: 8, 8>}, {pipeline_mode = #tpu.pipeline_mode<synchronous>, transform_indices = @transform_1, window_bounds = array<i64: 8, 10>}, {pipeline_mode = #tpu.pipeline_mode<synchronous>, transform_indices = @transform_2, window_bounds = array<i64: 1, 10>}, {transform_indices = @transform_3, window_bounds = array<i64: 8, 10>}]} {
    %c0 = arith.constant 0 : index
    %c0_0 = arith.constant 0 : index
    %0 = vector.load %arg1[%c0, %c0_0] : memref<8x8xf32, #tpu.memory_space<vmem>>, vector<8x8xf32>
    %c0_1 = arith.constant 0 : index
    %c0_2 = arith.constant 0 : index
    %1 = vector.load %arg2[%c0_1, %c0_2] : memref<8x10xf32, #tpu.memory_space<vmem>>, vector<8x10xf32>
    %cst = arith.constant dense<0.000000e+00> : vector<8x10xf32>
    %2 = tpu.matmul %0, %1, %cst {dimension_numbers = #tpu.dot_dimension_numbers<[1], [0], [0], [1], [0, 0, 1, 1], [], []>} : vector<8x8xf32>, vector<8x10xf32>, vector<8x10xf32> -> vector<8x10xf32>
    %c0_3 = arith.constant 0 : index
    %c0_4 = arith.constant 0 : index
    %3 = vector.load %arg3[%c0_3, %c0_4] : memref<1x10xf32, #tpu.memory_space<vmem>>, vector<1x10xf32>
    %4 = vector.broadcast %3 : vector<1x10xf32> to vector<8x10xf32>
    %5 = arith.addf %2, %4 : vector<8x10xf32>
    %c0_5 = arith.constant 0 : index
    %c0_6 = arith.constant 0 : index
    %6 = vector.load %arg4[%c0_5, %c0_6] : memref<8x10xf32, #tpu.memory_space<vmem>>, vector<8x10xf32>
    tpu.vector_store %arg4[%c0_5, %c0_6], %5 {strides = array<i32>} : memref<8x10xf32, #tpu.memory_space<vmem>>, vector<8x10xf32>,
    return
  }
  func.func @transform_0(%arg0: i32) -> (i32, i32) {
    %c0_i32 = arith.constant 0 : i32
    %c0_i32_0 = arith.constant 0 : i32
    return %arg0, %c0_i32 : i32, i32
  }
  func.func @transform_1(%arg0: i32) -> (i32, i32) {
    %c0_i32 = arith.constant 0 : i32
    %c0_i32_0 = arith.constant 0 : i32
    %c0_i32_1 = arith.constant 0 : i32
    return %c0_i32, %c0_i32_0 : i32, i32
  }
  func.func @transform_2(%arg0: i32) -> (i32, i32) {
    %c0_i32 = arith.constant 0 : i32
    %c0_i32_0 = arith.constant 0 : i32
    %c0_i32_1 = arith.constant 0 : i32
    return %c0_i32, %c0_i32_0 : i32, i32
  }
  func.func @transform_3(%arg0: i32) -> (i32, i32) {
    %c0_i32 = arith.constant 0 : i32
    %c0_i32_0 = arith.constant 0 : i32
    return %arg0, %c0_i32 : i32, i32
  }
}

</mosaic_0001>

<bundles_post_ra>
// kernel: tpu_custom_call.1
= control target key start
LH: loop header
LB: loop body
LE: loop exit
PB: predicated region body
PF: predicated region fallthrough
CT: control target
= control target key end

     0   :  { %8 = vsyncpa [#allocation3], 0  ;;  %s304_s0 = inlined_call_operand.hbm [shape: f32[2,8], index: 0, kind: input, shape index: {}]   ;;  %s305_s1 = inlined_call_operand.hbm [shape: f32[8,10], index: 1, kind: input, shape index: {}]   ;;  %s306_s2 = inlined_call_operand.vmem [shape: f32[1,10], index: 2, kind: input, shape index: {}]   ;;  %s307_s3 = inlined_call_operand.hbm [shape: f32[2,10], index: 3, kind: output, shape index: {}]  }
   0x1   :  { %9 = vsyncpa [#allocation6], 0 }
   0x2   :  { %10 = vsyncpa [#allocation4], 0 }
   0x3   :  { %15 = vsyncadd [#allocation3], 96  ;;  %s232_s12 = smov [#allocation2]   ;;  %s160_s16 = scalar_lea.hbm %s304_s0, 32 }
   0x4   :  { %s16_s13 = sshll.u32 %s232_s12, 4  ;;  %p161_p0 = scmp.ne.s32.totalorder %s304_s0, %s160_s16  ;;  %s17_s13 = int_to_ptr.vmem [resolvable:$true] %s16_s13 }
   0x5   :  { %p164_p1 = scmp.lt.u32.totalorder %s160_s16, %s304_s0 }
   0x7   :  { %p166_p2 = pnand %p164_p1, %p161_p0 }
   0x9   :  { %169 = shalt.err (!%p166_p2)
}
   0xa   :  { %s170_s21 = scalar_lea.vmem %s17_s13, 32  ;;  %s174_s22 = scalar_lea.vmem %s17_s13, 128 }
   0xb   :  { %p171_p3 = scmp.ne.s32.totalorder %s17_s13, %s170_s21  ;;  %p175_p4 = scmp.lt.s32.totalorder %s17_s13, %s17_s13 }
   0xc   :  { %p176_p5 = scmp.lt.s32.totalorder %s174_s22, %s170_s21 }
   0xe   :  { %p177_p6 = por %p176_p5, %p175_p4 }
  0x10   :  { %p178_p7 = pnand %p177_p6, %p171_p3 }
  0x12   :  { %181 = shalt.err (!%p178_p7)
}
  0x13   :  { %s233_s23 = smov 32   ;;  %s234_s24 = smov 2  }
  0x14   :  { %22 = dma.hbm_to_vmem [thread:$0]  %s304_s0, 32, %s17_s13, [#allocation3], %s233_s23, %s233_s23, %s234_s24  }
  0x15   :  { %s235_s27 = smov [#allocation5]   ;;  %s182_s4 = scalar_lea.hbm %s305_s1, 128 }
  0x16   :  { %s29_s28 = sshll.u32 %s235_s27, 4  ;;  %p183_p8 = scmp.ne.s32.totalorder %s305_s1, %s182_s4  ;;  %s30_s28 = int_to_ptr.vmem [resolvable:$true] %s29_s28 }
  0x17   :  { %p186_p9 = scmp.lt.u32.totalorder %s182_s4, %s305_s1 }
  0x19   :  { %p188_p10 = pnand %p186_p9, %p183_p8 }
  0x1b   :  { %191 = shalt.err (!%p188_p10)
}
  0x1c   :  { %s192_s9 = scalar_lea.vmem %s30_s28, 128  ;;  %p197_p12 = scmp.lt.s32.totalorder %s30_s28, %s30_s28 }
  0x1d   :  { %p193_p11 = scmp.ne.s32.totalorder %s30_s28, %s192_s9  ;;  %p198_p13 = scmp.lt.s32.totalorder %s192_s9, %s192_s9 }
  0x1f   :  { %p199_p0 = por %p198_p13, %p197_p12 }
  0x21   :  { %p200_p1 = pnand %p199_p0, %p193_p11 }
  0x23   :  { %203 = shalt.err (!%p200_p1)
}
  0x24   :  { %32 = dma.hbm_to_vmem [thread:$0]  %s305_s1, 128, %s30_s28, [#allocation6]  }
  0x25   :  { %226 = dma.done.wait [#allocation3], 128  }
  0x26   :  { %227 = vsyncadd [#allocation3], 4294967168 }
  0x27   :  { %228 = dma.done.wait [#allocation6], 128  }
  0x28   :  { %229 = vsyncadd [#allocation6], 4294967168  ;;  %v236_v0 = vmov 0.0   ;;  %vm237_vm0 = vmmov 0   ;;  %vm50_vm1 = vcmask 64512   ;;  %v42_v1 = vld [vmem:[#allocation5] sm:$0xff] }
  0x29   :  { %148 = vmatprep.subr.mxu0 %v236_v0  ;;  %150 = vmatprep.mubr.msk.f32.mxu0 %vm237_vm0, %v236_v0  ;;  %v41_v2 = vld [vmem:[#allocation2] sm:$0xff]  ;;  %vm124_vm2 = vcmask 80896  }
  0x2a   :  { %149 = vmatpush3.msra.mxu0 %v42_v1  ;;  %v144_v3 = vld [vmem:[%s306_s2] ss:$0 sm:$0xff] }
  0x2b   :  { %151 = vmatmul.mubr.msk.f32.vlgmr.msra.gmra.mrb[0].mxu0 %vm50_vm1, %v41_v2 }
  0xfe   :  { %v120_v4 = vpop.f32.mrb[0].mxu0 }
  0xff   :  { %v121_v5 = vadd.f32 %v144_v3, %v120_v4  ;;  %v152_v6 = vpop.f32.mrb[1].mxu0 }
 0x101   :  { %125 = vst.msk [vmem:[#allocation7] sm:$0xff] %vm124_vm2, %v121_v5 }
 0x102   :  { %130 = vsyncadd [#allocation4], 96  ;;  %s238_s1 = smov [#allocation7]  }
 0x103   :  { %s131_s13 = sshll.u32 %s238_s1, 4  ;;  %s132_s13 = int_to_ptr.vmem [resolvable:$true] %s131_s13 }
 0x104   :  { %s204_s14 = scalar_lea.vmem %s132_s13, 32  ;;  %s208_s15 = scalar_lea.vmem %s132_s13, 128 }
 0x105   :  { %p205_p2 = scmp.ne.s32.totalorder %s132_s13, %s204_s14  ;;  %p209_p3 = scmp.lt.s32.totalorder %s132_s13, %s132_s13 }
 0x106   :  { %p210_p4 = scmp.lt.s32.totalorder %s208_s15, %s204_s14 }
 0x108   :  { %p211_p5 = por %p210_p4, %p209_p3 }
 0x10a   :  { %p212_p6 = pnand %p211_p5, %p205_p2 }
 0x10c   :  { %215 = shalt.err (!%p212_p6)
}
 0x10d   :  { %s216_s2 = scalar_lea.hbm %s307_s3, 32 }
 0x10e   :  { %p217_p7 = scmp.ne.s32.totalorder %s307_s3, %s216_s2  ;;  %p220_p8 = scmp.lt.u32.totalorder %s216_s2, %s307_s3 }
 0x110   :  { %p222_p9 = pnand %p220_p8, %p217_p7 }
 0x112   :  { %225 = shalt.err (!%p222_p9)
}
 0x113   :  { %137 = dma.vmem_to_hbm [thread:$0]  %s132_s13, 32, %s307_s3, [#allocation4], %s233_s23, %s233_s23, %s234_s24  }
 0x114   :  { %230 = dma.done.wait [#allocation4], 128  }
 0x115   :  { %231 = vsyncadd [#allocation4], 4294967168 }
 0x116   :  { %141 = vsyncpa [#allocation3], 1 }
 0x117   :  { %142 = vsyncpa [#allocation6], 1 }
 0x118   :  { %143 = vsyncpa [#allocation4], 1 }

</bundles_post_ra>
